<compile_context>
chip_gen: v5e
topology: v5e:2x2
jax: 0.10.0
libtpu: 0.0.40
codegen_flags: <defaults>
</compile_context>

<pallas_src>
import functools

import jax
import jax.numpy as jnp
from jax import lax
from jax.experimental import pallas as pl
from jax.experimental.pallas import tpu as pltpu

BN_EPS = 1e-5
LANE = 128


def _round_up(v, m):
    return (v + m - 1) // m * m


def _im2col_nhwc(x_nhwc, kh, kw, stride, padding, dilation):
    """x_nhwc: (N, H, W, Cin) -> patches (N*OH*OW, KH*KW*Cin), K-order (kh, kw, cin)."""
    n, h, w, cin = x_nhwc.shape
    sh, sw = stride
    ph, pw = padding
    dh, dw = dilation
    oh = (h + 2 * ph - dh * (kh - 1) - 1) // sh + 1
    ow = (w + 2 * pw - dw * (kw - 1) - 1) // sw + 1
    xp = jnp.pad(x_nhwc, ((0, 0), (ph, ph), (pw, pw), (0, 0)))
    cols = []
    for i in range(kh):
        for j in range(kw):
            h0, w0 = i * dh, j * dw
            cols.append(xp[:, h0:h0 + (oh - 1) * sh + 1:sh,
                           w0:w0 + (ow - 1) * sw + 1:sw, :])      # (N, OH, OW, Cin)
    # (N, OH, OW, KH*KW, Cin) -> layout-preserving reshape (no transpose pass).
    patches = jnp.stack(cols, axis=3).reshape(n * oh * ow, kh * kw * cin)
    return patches, oh, ow


def _vmem_bytes(tm, k, cp):
    """Rough per-pass VMEM footprint (double-buffered windows)."""
    pass1 = (2 * tm * k * 2          # patch window (bf16, 2 buffers)
             + 2 * k * cp * 2        # weight (constant index map, still 2-buffered)
             + 2 * tm * cp * 2       # bf16 conv-intermediate output window
             + 2 * 2 * 8 * cp * 4)   # sum/ssq (8, Cp) partials
    pass2 = 2 * tm * cp * (2 + 4)    # bf16 in + f32 out windows
    return max(pass1, pass2)


@functools.partial(
    jax.jit,
    static_argnames=("stride", "padding", "dilation", "tile_m", "out_dtype"))
def conv2d_batchnorm_relu(x, weight, bias, gamma, beta,
                          stride=(1, 1), padding=(1, 1), dilation=(1, 1),
                          tile_m=512, out_dtype=jnp.float32):
    """x: (N, Cin, H, W) f32; weight: (Cout, Cin, KH, KW); returns (N, Cout, OH, OW)."""
    def _pair(v):
        return (v, v) if isinstance(v, int) else tuple(v)
    stride, padding, dilation = _pair(stride), _pair(padding), _pair(dilation)

    # Conv bias cancels exactly under training-mode BatchNorm (mean subtraction),
    # so it is not fed to the kernel (saves a full (M, Cout) VPU pass + DMA).
    del bias
    n, cin, h, w = x.shape
    cout, _, kh, kw = weight.shape

    # NHWC im2col in bf16 (halves HBM traffic of the expanded patch tensor).
    x_nhwc = jnp.transpose(x, (0, 2, 3, 1)).astype(jnp.bfloat16)
    patches, oh, ow = _im2col_nhwc(x_nhwc, kh, kw, stride, padding, dilation)
    m, k = patches.shape                       # m = n*oh*ow, k = kh*kw*cin

    # Weight -> (K, Cout), K-order (kh, kw, cin) to match the patches, bf16 for MXU.
    w2 = jnp.transpose(weight, (2, 3, 1, 0)).reshape(k, cout).astype(jnp.bfloat16)

    # Pad only Cout: 128 for narrow layers, 256-aligned for wide ones (v6e/v7x MXU).
    cp = LANE if cout <= LANE else _round_up(cout, 2 * LANE)
    w2p = jnp.pad(w2, ((0, 0), (0, cp - cout)))
    gamma_p = jnp.pad(gamma.astype(jnp.float32), (0, cp - cout))
    beta_p = jnp.pad(beta.astype(jnp.float32), (0, cp - cout))

    # M tiling: no padded copy of the patch tensor; ragged last tile is masked
    # in-kernel.  Clamp the tile by a VMEM estimate (important on v7x, 64 MiB).
    tm = min(_round_up(tile_m, 8), _round_up(m, 8))
    while _vmem_bytes(tm, k, cp) > (36 << 20) and tm > 64:
        tm = max(64, _round_up(tm // 2, 8))
    grid_m = -(-m // tm)
    split = 2 if grid_m % 2 == 0 else 1        # 2-way TC split for v7x megacore
    half = grid_m // split
    ragged = (m % tm) != 0

    est = _vmem_bytes(tm, k, cp)
    vmem_limit = None
    if est > (12 << 20):
        vmem_limit = min(int(est * 1.6) + (4 << 20), 56 << 20)

    # ---- Pass 1: GEMM tile -> store bf16 conv output + accumulate sum/ssq ----
    def stats_kernel(p_ref, w_ref, y_ref, sum_ref, ssq_ref):
        @pl.when(pl.program_id(1) == 0)
        def _():
            sum_ref[...] = jnp.zeros_like(sum_ref)
            ssq_ref[...] = jnp.zeros_like(ssq_ref)

        y = jnp.dot(p_ref[...], w_ref[...], preferred_element_type=jnp.float32)
        y_ref[...] = y.astype(y_ref.dtype)     # bf16 conv intermediate (reused by pass 2)

        if ragged:                              # static: emitted only when needed
            start = (pl.program_id(0) * half + pl.program_id(1)) * tm
            rows = lax.broadcasted_iota(jnp.int32, (tm, 1), 0)
            y = jnp.where(start + rows < m, y, 0.0)

        # (8, Cp) sublane partials: pure VPU adds; XLU collapse deferred to XLA.
        yr = y.reshape(tm // 8, 8, cp)
        sum_ref[0] += jnp.sum(yr, axis=0)
        ssq_ref[0] += jnp.sum(yr * yr, axis=0)

    patch_spec = pl.BlockSpec((tm, k), lambda c, i: (c * half + i, 0))
    weight_spec = pl.BlockSpec((k, cp), lambda c, i: (0, 0))
    conv_out_spec = pl.BlockSpec((tm, cp), lambda c, i: (c * half + i, 0))
    stat_spec = pl.BlockSpec((1, 8, cp), lambda c, i: (c, 0, 0))

    conv_bf16, sum_parts, ssq_parts = pl.pallas_call(
        stats_kernel,
        out_shape=(jax.ShapeDtypeStruct((m, cp), jnp.bfloat16),
                   jax.ShapeDtypeStruct((split, 8, cp), jnp.float32),
                   jax.ShapeDtypeStruct((split, 8, cp), jnp.float32)),
        grid=(split, half),
        in_specs=[patch_spec, weight_spec],
        out_specs=(conv_out_spec, stat_spec, stat_spec),
        compiler_params=pltpu.CompilerParams(
            dimension_semantics=("parallel", "arbitrary"),
            vmem_limit_bytes=vmem_limit),
    )(patches, w2p)

    # ---- Finalize stats on tiny (Cp,) vectors (biased variance, as PyTorch BN) ----
    ch_sum = jnp.sum(sum_parts, axis=(0, 1))
    ch_ssq = jnp.sum(ssq_parts, axis=(0, 1))
    count = jnp.float32(m)                     # masked/absent rows contribute zero
    mean = ch_sum / count
    # TODO(synk): E[x^2]-E[x]^2 can cancel for channels with |mean| >> std; switch
    # to a per-channel pre-shift (shifted-data variance) if that regime matters.
    var = jnp.maximum(ch_ssq / count - mean * mean, 0.0)
    inv_std = lax.rsqrt(var + BN_EPS)
    scale = (gamma_p * inv_std).reshape(1, cp)
    shift = (beta_p - mean * gamma_p * inv_std).reshape(1, cp)

    # ---- Pass 2: pure elementwise BN affine + ReLU over the stored conv ----
    def affine_relu_kernel(y_ref, scale_ref, shift_ref, o_ref):
        y = y_ref[...].astype(jnp.float32)
        o_ref[...] = jnp.maximum(y * scale_ref[...] + shift_ref[...],
                                 0.0).astype(o_ref.dtype)

    out_flat = pl.pallas_call(
        affine_relu_kernel,
        out_shape=jax.ShapeDtypeStruct((m, cp), out_dtype),
        grid=(grid_m,),
        in_specs=[pl.BlockSpec((tm, cp), lambda i: (i, 0)),
                  pl.BlockSpec((1, cp), lambda i: (0, 0)),
                  pl.BlockSpec((1, cp), lambda i: (0, 0))],
        out_specs=pl.BlockSpec((tm, cp), lambda i: (i, 0)),
        compiler_params=pltpu.CompilerParams(
            dimension_semantics=("parallel",),
            vmem_limit_bytes=vmem_limit),
    )(conv_bf16, scale, shift)

    # (M, Cp) -> (N, OH, OW, Cout) -> NCHW (PyTorch module layout).
    # NOTE: consumers that accept NHWC can skip this transpose (saves a full pass),
    # and out_dtype=bf16 halves the pass-2 writeback if acceptable downstream.
    out = out_flat[:, :cout].reshape(n, oh, ow, cout)
    return jnp.transpose(out, (0, 3, 1, 2))


def _reference(x, weight, bias, gamma, beta, stride, padding, dilation):
    # Mirrors the kernel's intentional quantisation: bf16 GEMM inputs, f32
    # accumulation, bf16 conv intermediate between the two passes.  The conv bias
    # cancels exactly under training-mode BatchNorm, so it is unused here as well.
    del bias
    xq = x.astype(jnp.bfloat16).astype(jnp.float32)
    wq = weight.astype(jnp.bfloat16).astype(jnp.float32)
    y = lax.conv_general_dilated(
        xq, wq, window_strides=stride,
        padding=[(padding[0],) * 2, (padding[1],) * 2],
        rhs_dilation=dilation, dimension_numbers=("NCHW", "OIHW", "NCHW"),
        preferred_element_type=jnp.float32)
    mean = jnp.mean(y, axis=(0, 2, 3), keepdims=True)
    var = jnp.mean((y - mean) ** 2, axis=(0, 2, 3), keepdims=True)
    y_q = y.astype(jnp.bfloat16).astype(jnp.float32)    # kernel's stored intermediate
    y = (y_q - mean) * lax.rsqrt(var + BN_EPS)
    y = gamma.reshape(1, -1, 1, 1) * y + beta.reshape(1, -1, 1, 1)
    return jnp.maximum(y, 0.0)


if __name__ == "__main__":
    # Module hyperparams (synthetic, deterministic init).
    in_channels, out_channels = 4, 8
    kernel_size, stride, padding, dilation = 3, (1, 1), (1, 1), (1, 1)
    batch, hw = 2, 16

    key = jax.random.PRNGKey(0)
    kx, kw_, kb, kg, kbe = jax.random.split(key, 5)
    x = jax.random.normal(kx, (batch, in_channels, hw, hw), jnp.float32)
    fan_in = in_channels * kernel_size * kernel_size
    weight = jax.random.normal(
        kw_, (out_channels, in_channels, kernel_size, kernel_size),
        jnp.float32) * (1.0 / fan_in) ** 0.5
    bias = jax.random.normal(kb, (out_channels,), jnp.float32) * 0.1   # conv bias=True
    gamma = 1.0 + 0.1 * jax.random.normal(kg, (out_channels,), jnp.float32)
    beta = 0.1 * jax.random.normal(kbe, (out_channels,), jnp.float32)

    # tile_m=128 so this small demo (M = 2*16*16 = 512) exercises multi-tile stats
    # accumulation, the 2-way pass-1 core split, and DMA/compute pipelining.
    # For large layers keep the default tile_m=512 (VMEM-safe on v5e/v6e/v7x).
    out = conv2d_batchnorm_relu(x, weight, bias, gamma, beta,
                                stride=stride, padding=padding,
                                dilation=dilation, tile_m=128)
    out = jax.block_until_ready(out)

    ref = _reference(x, weight, bias, gamma, beta, stride, padding, dilation)
    assert out.shape == ref.shape == (batch, out_channels, hw, hw)
    err = jnp.abs(out - ref)
    # Worst case is one bf16 ulp of the conv intermediate (both kernel and
    # reference quantise it, but f32 accumulation order may flip a rounding).
    max_err, mean_err = float(jnp.max(err)), float(jnp.mean(err))
    assert max_err < 3e-2 and mean_err < 2e-3, (max_err, mean_err)

    print("KERNEL_OK")
</pallas_src>

<mosaic_0001>
module attributes {stable_mosaic.version = 11 : i64} {
  func.func @stats_kernel(%arg0: i32, %arg1: i32, %arg2: memref<128x36xbf16, #tpu.memory_space<vmem>>, %arg3: memref<36x128xbf16, #tpu.memory_space<vmem>>, %arg4: memref<128x128xbf16, #tpu.memory_space<vmem>>, %arg5: memref<1x8x128xf32, #tpu.memory_space<vmem>>, %arg6: memref<1x8x128xf32, #tpu.memory_space<vmem>>) attributes {dimension_semantics = [#tpu.dimension_semantics<parallel>, #tpu.dimension_semantics<arbitrary>], iteration_bounds = array<i64: 2, 2>, scalar_prefetch = 0 : i64, scratch_operands = 0 : i64, tpu.core_type = #tpu.core_type<tc>, window_params = [{transform_indices = @transform_0, window_bounds = array<i64: 128, 36>}, {pipeline_mode = #tpu.pipeline_mode<synchronous>, transform_indices = @transform_1, window_bounds = array<i64: 36, 128>}, {transform_indices = @transform_2, window_bounds = array<i64: 128, 128>}, {transform_indices = @transform_3, window_bounds = array<i64: 1, 8, 128>}, {transform_indices = @transform_4, window_bounds = array<i64: 1, 8, 128>}]} {
    %c0_i32 = arith.constant 0 : i32
    %0 = arith.cmpi eq, %arg1, %c0_i32 : i32
    %1 = arith.extui %0 : i1 to i32
    %c0_i32_0 = arith.constant 0 : i32
    %2 = arith.cmpi ne, %1, %c0_i32_0 : i32
    scf.if %2 {
      %cst_20 = arith.constant 0.000000e+00 : f32
      %24 = vector.broadcast %cst_20 : f32 to vector<1x8x128xf32>
      %c0_21 = arith.constant 0 : index
      %c0_22 = arith.constant 0 : index
      %c0_23 = arith.constant 0 : index
      %25 = vector.load %arg5[%c0_21, %c0_22, %c0_23] : memref<1x8x128xf32, #tpu.memory_space<vmem>>, vector<1x8x128xf32>
      tpu.vector_store %arg5[%c0_21, %c0_22, %c0_23], %24 {strides = array<i32>} : memref<1x8x128xf32, #tpu.memory_space<vmem>>, vector<1x8x128xf32>,
      %cst_24 = arith.constant 0.000000e+00 : f32
      %26 = vector.broadcast %cst_24 : f32 to vector<1x8x128xf32>
      %c0_25 = arith.constant 0 : index
      %c0_26 = arith.constant 0 : index
      %c0_27 = arith.constant 0 : index
      %27 = vector.load %arg6[%c0_25, %c0_26, %c0_27] : memref<1x8x128xf32, #tpu.memory_space<vmem>>, vector<1x8x128xf32>
      tpu.vector_store %arg6[%c0_25, %c0_26, %c0_27], %26 {strides = array<i32>} : memref<1x8x128xf32, #tpu.memory_space<vmem>>, vector<1x8x128xf32>,
    } else {
    }
    %c0 = arith.constant 0 : index
    %c0_1 = arith.constant 0 : index
    %3 = vector.load %arg2[%c0, %c0_1] : memref<128x36xbf16, #tpu.memory_space<vmem>>, vector<128x36xbf16>
    %c0_2 = arith.constant 0 : index
    %c0_3 = arith.constant 0 : index
    %4 = vector.load %arg3[%c0_2, %c0_3] : memref<36x128xbf16, #tpu.memory_space<vmem>>, vector<36x128xbf16>
    %cst = arith.constant dense<0.000000e+00> : vector<128x128xf32>
    %5 = tpu.matmul %3, %4, %cst {dimension_numbers = #tpu.dot_dimension_numbers<[1], [0], [0], [1], [0, 0, 1, 1], [], []>} : vector<128x36xbf16>, vector<36x128xbf16>, vector<128x128xf32> -> vector<128x128xf32>
    %6 = arith.truncf %5 : vector<128x128xf32> to vector<128x128xbf16>
    %c0_4 = arith.constant 0 : index
    %c0_5 = arith.constant 0 : index
    %7 = vector.load %arg4[%c0_4, %c0_5] : memref<128x128xbf16, #tpu.memory_space<vmem>>, vector<128x128xbf16>
    tpu.vector_store %arg4[%c0_4, %c0_5], %6 {strides = array<i32>} : memref<128x128xbf16, #tpu.memory_space<vmem>>, vector<128x128xbf16>,
    %8 = vector.shape_cast %5 : vector<128x128xf32> to vector<16x8x128xf32>
    %c0_6 = arith.constant 0 : index
    %c0_7 = arith.constant 0 : index
    %c0_8 = arith.constant 0 : index
    %9 = vector.load %arg5[%c0_6, %c0_7, %c0_8] : memref<1x8x128xf32, #tpu.memory_space<vmem>>, vector<1x8x128xf32>
    %10 = vector.shape_cast %9 : vector<1x8x128xf32> to vector<8x128xf32>
    %cst_9 = arith.constant dense<0.000000e+00> : vector<8x128xf32>
    %11 = vector.multi_reduction <add>, %8, %cst_9 [0] : vector<16x8x128xf32> to vector<8x128xf32>
    %12 = arith.addf %10, %11 : vector<8x128xf32>
    %c0_10 = arith.constant 0 : index
    %c0_11 = arith.constant 0 : index
    %c0_12 = arith.constant 0 : index
    %13 = vector.load %arg5[%c0_10, %c0_11, %c0_12] : memref<1x8x128xf32, #tpu.memory_space<vmem>>, vector<1x8x128xf32>
    %14 = vector.shape_cast %13 : vector<1x8x128xf32> to vector<8x128xf32>
    %15 = vector.shape_cast %12 : vector<8x128xf32> to vector<1x8x128xf32>
    tpu.vector_store %arg5[%c0_10, %c0_11, %c0_12], %15 {strides = array<i32>} : memref<1x8x128xf32, #tpu.memory_space<vmem>>, vector<1x8x128xf32>,
    %c0_13 = arith.constant 0 : index
    %c0_14 = arith.constant 0 : index
    %c0_15 = arith.constant 0 : index
    %16 = vector.load %arg6[%c0_13, %c0_14, %c0_15] : memref<1x8x128xf32, #tpu.memory_space<vmem>>, vector<1x8x128xf32>
    %17 = vector.shape_cast %16 : vector<1x8x128xf32> to vector<8x128xf32>
    %18 = arith.mulf %8, %8 : vector<16x8x128xf32>
    %cst_16 = arith.constant dense<0.000000e+00> : vector<8x128xf32>
    %19 = vector.multi_reduction <add>, %18, %cst_16 [0] : vector<16x8x128xf32> to vector<8x128xf32>
    %20 = arith.addf %17, %19 : vector<8x128xf32>
    %c0_17 = arith.constant 0 : index
    %c0_18 = arith.constant 0 : index
    %c0_19 = arith.constant 0 : index
    %21 = vector.load %arg6[%c0_17, %c0_18, %c0_19] : memref<1x8x128xf32, #tpu.memory_space<vmem>>, vector<1x8x128xf32>
    %22 = vector.shape_cast %21 : vector<1x8x128xf32> to vector<8x128xf32>
    %23 = vector.shape_cast %20 : vector<8x128xf32> to vector<1x8x128xf32>
    tpu.vector_store %arg6[%c0_17, %c0_18, %c0_19], %23 {strides = array<i32>} : memref<1x8x128xf32, #tpu.memory_space<vmem>>, vector<1x8x128xf32>,
    return
  }
  func.func @transform_0(%arg0: i32, %arg1: i32) -> (i32, i32) {
    %c2_i32 = arith.constant 2 : i32
    %0 = arith.muli %arg0, %c2_i32 : i32
    %1 = arith.addi %0, %arg1 : i32
    %c0_i32 = arith.constant 0 : i32
    %c0_i32_0 = arith.constant 0 : i32
    return %1, %c0_i32 : i32, i32
  }
  func.func @transform_1(%arg0: i32, %arg1: i32) -> (i32, i32) {
    %c0_i32 = arith.constant 0 : i32
    %c0_i32_0 = arith.constant 0 : i32
    %c0_i32_1 = arith.constant 0 : i32
    return %c0_i32, %c0_i32_0 : i32, i32
  }
  func.func @transform_2(%arg0: i32, %arg1: i32) -> (i32, i32) {
    %c2_i32 = arith.constant 2 : i32
    %0 = arith.muli %arg0, %c2_i32 : i32
    %1 = arith.addi %0, %arg1 : i32
    %c0_i32 = arith.constant 0 : i32
    %c0_i32_0 = arith.constant 0 : i32
    return %1, %c0_i32 : i32, i32
  }
  func.func @transform_3(%arg0: i32, %arg1: i32) -> (i32, i32, i32) {
    %c0_i32 = arith.constant 0 : i32
    %c0_i32_0 = arith.constant 0 : i32
    %c0_i32_1 = arith.constant 0 : i32
    return %arg0, %c0_i32, %c0_i32_0 : i32, i32, i32
  }
  func.func @transform_4(%arg0: i32, %arg1: i32) -> (i32, i32, i32) {
    %c0_i32 = arith.constant 0 : i32
    %c0_i32_0 = arith.constant 0 : i32
    %c0_i32_1 = arith.constant 0 : i32
    return %arg0, %c0_i32, %c0_i32_0 : i32, i32, i32
  }
}

module attributes {stable_mosaic.version = 11 : i64} {
  func.func @affine_relu_kernel(%arg0: i32, %arg1: memref<128x128xbf16, #tpu.memory_space<vmem>>, %arg2: memref<1x128xf32, #tpu.memory_space<vmem>>, %arg3: memref<1x128xf32, #tpu.memory_space<vmem>>, %arg4: memref<128x128xf32, #tpu.memory_space<vmem>>) attributes {dimension_semantics = [#tpu.dimension_semantics<parallel>], iteration_bounds = array<i64: 4>, scalar_prefetch = 0 : i64, scratch_operands = 0 : i64, tpu.core_type = #tpu.core_type<tc>, window_params = [{transform_indices = @transform_0, window_bounds = array<i64: 128, 128>}, {pipeline_mode = #tpu.pipeline_mode<synchronous>, transform_indices = @transform_1, window_bounds = array<i64: 1, 128>}, {pipeline_mode = #tpu.pipeline_mode<synchronous>, transform_indices = @transform_2, window_bounds = array<i64: 1, 128>}, {transform_indices = @transform_3, window_bounds = array<i64: 128, 128>}]} {
    %c0 = arith.constant 0 : index
    %c0_0 = arith.constant 0 : index
    %0 = vector.load %arg1[%c0, %c0_0] : memref<128x128xbf16, #tpu.memory_space<vmem>>, vector<128x128xbf16>
    %1 = arith.extf %0 : vector<128x128xbf16> to vector<128x128xf32>
    %c0_1 = arith.constant 0 : index
    %c0_2 = arith.constant 0 : index
    %2 = vector.load %arg2[%c0_1, %c0_2] : memref<1x128xf32, #tpu.memory_space<vmem>>, vector<1x128xf32>
    %3 = vector.broadcast %2 : vector<1x128xf32> to vector<128x128xf32>
    %4 = arith.mulf %1, %3 : vector<128x128xf32>
    %c0_3 = arith.constant 0 : index
    %c0_4 = arith.constant 0 : index
    %5 = vector.load %arg3[%c0_3, %c0_4] : memref<1x128xf32, #tpu.memory_space<vmem>>, vector<1x128xf32>
    %6 = vector.broadcast %5 : vector<1x128xf32> to vector<128x128xf32>
    %7 = arith.addf %4, %6 : vector<128x128xf32>
    %cst = arith.constant 0.000000e+00 : f32
    %8 = vector.broadcast %cst : f32 to vector<128x128xf32>
    %9 = arith.maximumf %7, %8 : vector<128x128xf32>
    %c0_5 = arith.constant 0 : index
    %c0_6 = arith.constant 0 : index
    %10 = vector.load %arg4[%c0_5, %c0_6] : memref<128x128xf32, #tpu.memory_space<vmem>>, vector<128x128xf32>
    tpu.vector_store %arg4[%c0_5, %c0_6], %9 {strides = array<i32>} : memref<128x128xf32, #tpu.memory_space<vmem>>, vector<128x128xf32>,
    return
  }
  func.func @transform_0(%arg0: i32) -> (i32, i32) {
    %c0_i32 = arith.constant 0 : i32
    %c0_i32_0 = arith.constant 0 : i32
    return %arg0, %c0_i32 : i32, i32
  }
  func.func @transform_1(%arg0: i32) -> (i32, i32) {
    %c0_i32 = arith.constant 0 : i32
    %c0_i32_0 = arith.constant 0 : i32
    %c0_i32_1 = arith.constant 0 : i32
    return %c0_i32, %c0_i32_0 : i32, i32
  }
  func.func @transform_2(%arg0: i32) -> (i32, i32) {
    %c0_i32 = arith.constant 0 : i32
    %c0_i32_0 = arith.constant 0 : i32
    %c0_i32_1 = arith.constant 0 : i32
    return %c0_i32, %c0_i32_0 : i32, i32
  }
  func.func @transform_3(%arg0: i32) -> (i32, i32) {
    %c0_i32 = arith.constant 0 : i32
    %c0_i32_0 = arith.constant 0 : i32
    return %arg0, %c0_i32 : i32, i32
  }
}

</mosaic_0001>

<bundles_post_ra>
// kernel: conv2d_batchnorm_relu.3
= control target key start
LH: loop header
LB: loop body
LE: loop exit
PB: predicated region body
PF: predicated region fallthrough
CT: control target
= control target key end

     0   :  { %s422_s12 = smov 0   ;;  %s513_s0 = inlined_call_operand.vmem [shape: bf16[512,128], index: 0, kind: input, shape index: {}]   ;;  %s514_s1 = inlined_call_operand.vmem [shape: f32[1,128], index: 1, kind: input, shape index: {}]   ;;  %s515_s2 = inlined_call_operand.vmem [shape: f32[1,128], index: 2, kind: input, shape index: {}]   ;;  %s516_s3 = inlined_call_operand.vmem [shape: f32[512,128], index: 3, kind: output, shape index: {}]  }
   0x1 LB: > { %s334_s13 = sadd.s32 4294967295, %s400_s12   ;;  %p338_p0 = scmp.ge.s32.totalorder %s400_s12, 1  ;;  %s400_s12 = sphi %s422_s12, %s13_s12  }
   0x2   : > { %p138_p1 = scmp.lt.s32.totalorder %s400_s12, 5 }
   0x4   : > { %p139_p2 = pnand %p338_p0, %p138_p1 }
   0x5   : > { %s339_s14 = sshll.u32 (!%p139_p2), %s334_s13, 4 }
   0x6   : > { %142 = sbr.rel (%p139_p2) target bundleno = 39 (0x27), region = 32  ;;  %p163_p3 = scmp.lt.s32.totalorder (!%p139_p2), %s339_s14, 63 }
   0xb   : > { %s518_s14 = smov (!%p163_p3, %s339_s14), 63  ;;  %v441_v0 = vld [vmem:[%s514_s1] ss:$0 sm:$0xff] }
   0xc   : > { %s340_s15 = sshll.u32 %s518_s14, 2  ;;  %v449_v5 = vld [vmem:[%s515_s2] ss:$0 sm:$0xff]  ;;  %s342_s23 = sshll.u32 %s518_s14, 3 }
   0xd   : > { %s436_s18 = scalar_lea.vmem %s513_s0, %s340_s15  ;;  %s468_s26 = scalar_lea.vmem %s516_s3, %s342_s23 }
   0xe   : > { %v346_v1 = vld [vmem:[%s436_s18] sm:$0xff]   ;;  %v377_v2 = vld [vmem:[%s436_s18 + $0x8] sm:$0xff]   ;;  %v378_v3 = vld [vmem:[%s436_s18 + $0x10] sm:$0xff]  }
   0xf   : > { %v347_v4 = vunpack.c.l.bf16 %v346_v1  ;;  %v348_v6 = vunpack.c.h.bf16 %v346_v1  ;;  %v351_v7 = vunpack.c.l.bf16 %v377_v2  ;;  %v352_v8 = vunpack.c.h.bf16 %v377_v2  ;;  %v379_v9 = vld [vmem:[%s436_s18 + $0x18] sm:$0xff]   ;;  %v380_v30 = vld [vmem:[%s436_s18 + $0x20] sm:$0xff]   ;;  %v381_v31 = vld [vmem:[%s436_s18 + $0x28] sm:$0xff]  }
  0x10   : > { %v355_v10 = vunpack.c.l.bf16 %v378_v3  ;;  %v356_v11 = vunpack.c.h.bf16 %v378_v3  ;;  %v359_v12 = vunpack.c.l.bf16 %v379_v9  ;;  %v360_v13 = vunpack.c.h.bf16 %v379_v9  ;;  %v382_v36 = vld [vmem:[%s436_s18 + $0x30] sm:$0xff]   ;;  %v383_v37 = vld [vmem:[%s436_s18 + $0x38] sm:$0xff]  }
  0x11   : > { %v210_v14 = vmul.f32 %v441_v0, %v347_v4  ;;  %v211_v15 = vmul.f32 %v441_v0, %v348_v6  ;;  %v212_v16 = vmul.f32 %v441_v0, %v351_v7  ;;  %v213_v17 = vmul.f32 %v441_v0, %v352_v8 }
  0x12   : > { %v214_v18 = vmul.f32 %v441_v0, %v355_v10  ;;  %v215_v19 = vmul.f32 %v441_v0, %v356_v11  ;;  %v216_v20 = vmul.f32 %v441_v0, %v359_v12  ;;  %v217_v21 = vmul.f32 %v441_v0, %v360_v13 }
  0x13   : > { %v230_v22 = vadd.f32 %v449_v5, %v210_v14  ;;  %v231_v23 = vadd.f32 %v449_v5, %v211_v15  ;;  %v232_v24 = vadd.f32 %v449_v5, %v212_v16  ;;  %v233_v25 = vadd.f32 %v449_v5, %v213_v17 }
  0x14   : > { %v234_v26 = vadd.f32 %v449_v5, %v214_v18  ;;  %v235_v27 = vadd.f32 %v449_v5, %v215_v19  ;;  %v236_v28 = vadd.f32 %v449_v5, %v216_v20  ;;  %v237_v29 = vadd.f32 %v449_v5, %v217_v21 }
  0x15   : > { %v246_v32 = vmax.f32 %v230_v22, 0.0  ;;  %v247_v33 = vmax.f32 %v231_v23, 0.0  ;;  %v248_v34 = vmax.f32 %v232_v24, 0.0  ;;  %v249_v35 = vmax.f32 %v233_v25, 0.0 }
  0x16   : > { %v250_v38 = vmax.f32 %v234_v26, 0.0  ;;  %v251_v39 = vmax.f32 %v235_v27, 0.0  ;;  %v252_v40 = vmax.f32 %v236_v28, 0.0  ;;  %v253_v41 = vmax.f32 %v237_v29, 0.0 }
  0x17   : > { %262 = vst [vmem:[%s468_s26] sm:$0xff] %v246_v32  ;;  %v363_v42 = vunpack.c.l.bf16 %v380_v30  ;;  %v364_v43 = vunpack.c.h.bf16 %v380_v30  ;;  %v367_v44 = vunpack.c.l.bf16 %v381_v31  ;;  %v368_v45 = vunpack.c.h.bf16 %v381_v31 }
  0x18   : > { %263 = vst [vmem:[%s468_s26 + $0x8] sm:$0xff] %v247_v33  ;;  %v371_v46 = vunpack.c.l.bf16 %v382_v36  ;;  %v372_v47 = vunpack.c.h.bf16 %v382_v36  ;;  %v375_v48 = vunpack.c.l.bf16 %v383_v37  ;;  %v376_v49 = vunpack.c.h.bf16 %v383_v37 }
  0x19   : > { %264 = vst [vmem:[%s468_s26 + $0x10] sm:$0xff] %v248_v34  ;;  %v218_v50 = vmul.f32 %v441_v0, %v363_v42  ;;  %v219_v51 = vmul.f32 %v441_v0, %v364_v43  ;;  %v220_v52 = vmul.f32 %v441_v0, %v367_v44  ;;  %v221_v53 = vmul.f32 %v441_v0, %v368_v45 }
  0x1a   : > { %265 = vst [vmem:[%s468_s26 + $0x18] sm:$0xff] %v249_v35  ;;  %v222_v54 = vmul.f32 %v441_v0, %v371_v46  ;;  %v223_v55 = vmul.f32 %v441_v0, %v372_v47  ;;  %v224_v56 = vmul.f32 %v441_v0, %v375_v48  ;;  %v225_v57 = vmul.f32 %v441_v0, %v376_v49 }
  0x1b   : > { %266 = vst [vmem:[%s468_s26 + $0x20] sm:$0xff] %v250_v38  ;;  %v238_v58 = vadd.f32 %v449_v5, %v218_v50  ;;  %v239_v59 = vadd.f32 %v449_v5, %v219_v51  ;;  %v240_v60 = vadd.f32 %v449_v5, %v220_v52  ;;  %v241_v61 = vadd.f32 %v449_v5, %v221_v53 }
  0x1c   : > { %267 = vst [vmem:[%s468_s26 + $0x28] sm:$0xff] %v251_v39  ;;  %v242_v62 = vadd.f32 %v449_v5, %v222_v54  ;;  %v243_v63 = vadd.f32 %v449_v5, %v223_v55  ;;  %v244_v3 = vadd.f32 %v449_v5, %v224_v56  ;;  %v245_v6 = vadd.f32 %v449_v5, %v225_v57 }
  0x1d   : > { %268 = vst [vmem:[%s468_s26 + $0x30] sm:$0xff] %v252_v40  ;;  %v254_v0 = vmax.f32 %v238_v58, 0.0  ;;  %v255_v1 = vmax.f32 %v239_v59, 0.0  ;;  %v256_v2 = vmax.f32 %v240_v60, 0.0  ;;  %v257_v4 = vmax.f32 %v241_v61, 0.0 }
  0x1e   : > { %269 = vst [vmem:[%s468_s26 + $0x38] sm:$0xff] %v253_v41  ;;  %v258_v7 = vmax.f32 %v242_v62, 0.0  ;;  %v259_v8 = vmax.f32 %v243_v63, 0.0  ;;  %v260_v9 = vmax.f32 %v244_v3, 0.0  ;;  %v261_v10 = vmax.f32 %v245_v6, 0.0 }
  0x1f   : > { %270 = vst [vmem:[%s468_s26 + $0x40] sm:$0xff] %v254_v0 }
  0x20   : > { %271 = vst [vmem:[%s468_s26 + $0x48] sm:$0xff] %v255_v1 }
  0x21   : > { %272 = vst [vmem:[%s468_s26 + $0x50] sm:$0xff] %v256_v2 }
  0x22   : > { %273 = vst [vmem:[%s468_s26 + $0x58] sm:$0xff] %v257_v4 }
  0x23   : > { %274 = vst [vmem:[%s468_s26 + $0x60] sm:$0xff] %v258_v7 }
  0x24   : > { %275 = vst [vmem:[%s468_s26 + $0x68] sm:$0xff] %v259_v8 }
  0x25   : > { %276 = vst [vmem:[%s468_s26 + $0x70] sm:$0xff] %v260_v9 }
  0x26   : > { %277 = vst [vmem:[%s468_s26 + $0x78] sm:$0xff] %v261_v10 }
  0x27 PF: > { %s13_s12 = sadd.s32 1, %s400_s12  }
  0x28   : > { %p10_p4 = scmp.ge.s32.totalorder %s13_s12, 6  }
  0x2a   :  { %12 = sbr.rel (!%p10_p4) target bundleno = 1 (0x1), region = 62 }

// kernel: conv2d_batchnorm_relu.2
= control target key start
LH: loop header
LB: loop body
LE: loop exit
PB: predicated region body
PF: predicated region fallthrough
CT: control target
= control target key end

     0   :  { %s880_s15 = smov 0   ;;  %s882_s16 = smov 0   ;;  %s994_s0 = inlined_call_operand.vmem [shape: bf16[512,36], index: 0, kind: input, shape index: {}]   ;;  %s995_s1 = inlined_call_operand.vmem [shape: bf16[36,128], index: 1, kind: input, shape index: {}]   ;;  %s996_s2 = inlined_call_operand.vmem [shape: bf16[512,128], index: 2, kind: output, shape index: {0}]   ;;  %s997_s3 = inlined_call_operand.vmem [shape: f32[2,8,128], index: 3, kind: output, shape index: {1}]   ;;  %s998_s4 = inlined_call_operand.vmem [shape: f32[2,8,128], index: 4, kind: output, shape index: {2}]  }
   0x1   :  { %s884_s17 = smov 0   ;;  %s886_s18 = smov 0  }
   0x2   :  { %s888_s19 = smov 0  }
   0x3 LB: > { %s24_s20 = sadd.s32 1, %s844_s17  ;;  %s27_s21 = sadd.s32 1, %s848_s18  ;;  %s852_s19 = sphi %s888_s19, %s15_s19   ;;  %s848_s18 = sphi %s886_s18, %s1002_s18   ;;  %s844_s17 = sphi %s884_s17, %s1001_s17   ;;  %s840_s16 = sphi %s882_s16, %s1000_s16   ;;  %s836_s15 = sphi %s880_s15, %s999_s15  }
   0x4   : > { %p25_p0 = scmp.ge.s32.totalorder %s24_s20, 2  ;;  %p647_p1 = scmp.ge.s32.totalorder %s852_s19, 1 }
   0x5   : > { %p192_p2 = scmp.lt.s32.totalorder %s852_s19, 5 }
   0x6   : > { %s1004_s20 = smov (%p25_p0, %s24_s20), 0  ;;  %s1006_s21 = smov (!%p25_p0, %s27_s21), %s848_s18 }
   0x7   : > { %p193_p3 = pnand %p647_p1, %p192_p2  ;;  %p29_p4 = scmp.ge.s32.totalorder %s1006_s21, 2 }
   0x8   : > { %s648_s22 = sshll.u32 (!%p193_p3), %s840_s16, 1  ;;  %p250_p5 = scmp.lt.s32.totalorder (!%p193_p3), %s840_s16, 1 }
   0x9   : > { %s1008_s21 = smov (%p29_p4, %s1006_s21), 0  ;;  %196 = sbr.rel (%p193_p3) target bundleno = 224 (0xe0), region = 28 }
   0xa   : > { %s231_s23 = sadd.s32 (!%p193_p3), %s836_s15, %s648_s22  ;;  %p656_p7 = scmp.ne.s32.totalorder (!%p193_p3), %s836_s15, 0 }
   0xb   : > { %s649_s24 = sshll.u32 (!%p193_p3), %s231_s23, 4 }
   0xc   : > { %p233_p6 = scmp.lt.s32.totalorder (!%p193_p3), %s649_s24, 63 }
   0xe   : > { %s1010_s16 = smov (!%p250_p5, %s840_s16), 1  ;;  %s1012_s24 = smov (!%p233_p6, %s649_s24), 63 }
   0xf   : > { %s654_s25 = sshll.u32 %s1010_s16, 3  ;;  %s650_s26 = sshll.u32 %s1012_s24, 2 }
  0x10   : > { %s916_s29 = scalar_lea.vmem %s997_s3, %s654_s25  ;;  %s921_s6 = scalar_lea.vmem %s994_s0, %s650_s26 }
  0x11   : > { %s926_s9 = scalar_lea.vmem %s996_s2, %s650_s26  ;;  %s931_s12 = scalar_lea.vmem %s998_s4, %s654_s25 }
  0x12   : > { %262 = sbr.rel (%p656_p7) target bundleno = 26 (0x1a), region = 32 }
  0x17   : > { %v854_v0 = vmov 0.0  }
  0x18   : > { %263 = vst [vmem:[%s916_s29] sm:$0xff] %v854_v0 }
  0x19   : > { %264 = vst [vmem:[%s931_s12] sm:$0xff] %v854_v0 }
  0x1a PF: > { %v285_v1 = vld [vmem:[%s995_s1 + $0x10] sm:$0x3]  ;;  %vm366_vm0 = vcmask 1041408   ;;  %v716_v5 = vld [vmem:[%s995_s1 + $0x8] sm:$0xff]  ;;  %v715_v6 = vld [vmem:[%s995_s1] sm:$0xff]  ;;  %vm341_vm1 = vcmask 293888  }
  0x1b   : > { %v335_v2 = vunpack.c.l.b16 %v285_v1  ;;  %v707_v7 = vld [vmem:[%s921_s6] sm:$0xff]  ;;  %v709_v8 = vld [vmem:[%s921_s6 + $0x10] sm:$0xff]  ;;  %v708_v11 = vld [vmem:[%s921_s6 + $0x8] sm:$0xff] }
  0x1c   : > { %v711_v9 = vld [vmem:[%s921_s6 + $0x20] sm:$0xff]  ;;  %v713_v10 = vld [vmem:[%s921_s6 + $0x30] sm:$0xff]  ;;  %v710_v12 = vld [vmem:[%s921_s6 + $0x18] sm:$0xff] }
  0x1d   : > { %v338_v3 = vpack.c.b16 %v335_v2, %v335_v2  ;;  %v712_v13 = vld [vmem:[%s921_s6 + $0x28] sm:$0xff]  ;;  %v714_v14 = vld [vmem:[%s921_s6 + $0x38] sm:$0xff] }
  0x1f   : > { %v368_v4 = vsel %vm366_vm0, %v338_v3, 0 }
  0x20   : > { %375 = vmatpush.bf16.msra.mxu0 %v368_v4  ;;  %764 = vmatpush.bf16.msra.mxu1 %v368_v4 }
  0x21   : > { %765 = vmatpush.bf16.msra.mxu2 %v368_v4  ;;  %766 = vmatpush.bf16.msra.mxu3 %v368_v4 }
  0x24   : > { %376 = vmatpush.bf16.msra.mxu0 %v716_v5  ;;  %767 = vmatpush.bf16.msra.mxu1 %v716_v5 }
  0x25   : > { %768 = vmatpush.bf16.msra.mxu2 %v716_v5  ;;  %769 = vmatpush.bf16.msra.mxu3 %v716_v5 }
  0x28   : > { %377 = vmatpush.bf16.msra.mxu0 %v715_v6  ;;  %770 = vmatpush.bf16.msra.mxu1 %v715_v6 }
  0x29   : > { %771 = vmatpush.bf16.msra.mxu2 %v715_v6  ;;  %772 = vmatpush.bf16.msra.mxu3 %v715_v6 }
  0x2b   : > { %697 = vmatmul.msk.bf16.vlgmr.msra.gmra.mxu0 %vm341_vm1, %v707_v7  ;;  %699 = vmatmul.msk.bf16.vlgmr.msra.gmra.mxu1 %vm341_vm1, %v709_v8 }
  0x2c   : > { %701 = vmatmul.msk.bf16.vlgmr.msra.gmra.mxu2 %vm341_vm1, %v711_v9  ;;  %703 = vmatmul.msk.bf16.vlgmr.msra.gmra.mxu3 %vm341_vm1, %v713_v10 }
  0x3b   : > { %698 = vmatmul.msk.bf16.gmra.mxu0 %vm341_vm1, %v708_v11  ;;  %700 = vmatmul.msk.bf16.gmra.mxu1 %vm341_vm1, %v710_v12 }
  0x3c   : > { %702 = vmatmul.msk.bf16.gmra.mxu2 %vm341_vm1, %v712_v13  ;;  %704 = vmatmul.msk.bf16.gmra.mxu3 %vm341_vm1, %v714_v14 }
  0xa8   : > { %v379_v15 = vpop.f32.mrf.mxu0  ;;  %v389_v16 = vpop.f32.mrf.mxu1 }
  0xa9   : > { %v470_v30 = vmul.f32 %v379_v15, %v379_v15  ;;  %v474_v44 = vmul.f32 %v389_v16, %v389_v16 }
  0xaf   : > { %v399_v17 = vpop.f32.mrf.mxu2  ;;  %v961_v18 = vpop.f32.mrf.mxu3 }
  0xb0   : > { %v381_v19 = vpop.f32.mrf.mxu0  ;;  %v391_v20 = vpop.f32.mrf.mxu1  ;;  %v478_v60 = vmul.f32 %v399_v17, %v399_v17  ;;  %v482_v8 = vmul.f32 %v961_v18, %v961_v18 }
  0xb1   : > { %v720_v21 = vpack.c.bf16 %v381_v19, %v379_v15  ;;  %v730_v22 = vpack.c.bf16 %v391_v20, %v389_v16  ;;  %v471_v29 = vmul.f32 %v381_v19, %v381_v19  ;;  %v452_v32 = vadd.f32 %v381_v19, %v379_v15 }
  0xb2   : > { %v475_v47 = vmul.f32 %v391_v20, %v391_v20 }
  0xb3   : > { %721 = vst [vmem:[%s926_s9] sm:$0xff] %v720_v21   ;;  %v486_v33 = vadd.f32 %v471_v29, %v470_v30 }
  0xb4   : > { %758 = vst [vmem:[%s926_s9 + $0x10] sm:$0xff] %v730_v22   ;;  %v469_v22 = vld [vmem:[%s931_s12] sm:$0xff] }
  0xb7   : > { %v401_v23 = vpop.f32.mrf.mxu2  ;;  %v411_v24 = vpop.f32.mrf.mxu3 }
  0xb8   : > { %v384_v25 = vpop.f32.mrf.mxu0  ;;  %v394_v26 = vpop.f32.mrf.mxu1  ;;  %v740_v27 = vpack.c.bf16 %v401_v23, %v399_v17  ;;  %v750_v28 = vpack.c.bf16 %v411_v24, %v961_v18  ;;  %v479_v63 = vmul.f32 %v401_v23, %v401_v23  ;;  %v483_v11 = vmul.f32 %v411_v24, %v411_v24 }
  0xb9   : > { %v472_v31 = vmul.f32 %v384_v25, %v384_v25  ;;  %v453_v34 = vadd.f32 %v452_v32, %v384_v25  ;;  %v476_v50 = vmul.f32 %v394_v26, %v394_v26 }
  0xba   : > { %760 = vst [vmem:[%s926_s9 + $0x20] sm:$0xff] %v740_v27  }
  0xbb   : > { %762 = vst [vmem:[%s926_s9 + $0x30] sm:$0xff] %v750_v28   ;;  %v487_v37 = vadd.f32 %v486_v33, %v472_v31 }
  0xbf   : > { %v404_v35 = vpop.f32.mrf.mxu2  ;;  %v414_v36 = vpop.f32.mrf.mxu3 }
  0xc0   : > { %v386_v38 = vpop.f32.mrf.mxu0  ;;  %v396_v39 = vpop.f32.mrf.mxu1  ;;  %v480_v3 = vmul.f32 %v404_v35, %v404_v35  ;;  %v484_v15 = vmul.f32 %v414_v36, %v414_v36 }
  0xc1   : > { %v725_v40 = vpack.c.bf16 %v386_v38, %v384_v25  ;;  %v454_v41 = vadd.f32 %v453_v34, %v386_v38  ;;  %v473_v42 = vmul.f32 %v386_v38, %v386_v38  ;;  %v735_v43 = vpack.c.bf16 %v396_v39, %v394_v26 }
  0xc2   : > { %v477_v58 = vmul.f32 %v396_v39, %v396_v39 }
  0xc3   : > { %757 = vst [vmem:[%s926_s9 + $0x8] sm:$0xff] %v725_v40   ;;  %v455_v45 = vadd.f32 %v454_v41, %v389_v16  ;;  %v488_v46 = vadd.f32 %v487_v37, %v473_v42 }
  0xc4   : > { %759 = vst [vmem:[%s926_s9 + $0x18] sm:$0xff] %v735_v43  }
  0xc5   : > { %v489_v48 = vadd.f32 %v488_v46, %v474_v44  ;;  %v456_v49 = vadd.f32 %v455_v45, %v391_v20 }
  0xc7   : > { %v457_v51 = vadd.f32 %v456_v49, %v394_v26  ;;  %v490_v52 = vadd.f32 %v489_v48, %v475_v47  ;;  %v406_v53 = vpop.f32.mrf.mxu2  ;;  %v416_v54 = vpop.f32.mrf.mxu3 }
  0xc8   : > { %v745_v55 = vpack.c.bf16 %v406_v53, %v404_v35  ;;  %v755_v56 = vpack.c.bf16 %v416_v54, %v414_v36  ;;  %v481_v7 = vmul.f32 %v406_v53, %v406_v53  ;;  %v485_v21 = vmul.f32 %v416_v54, %v416_v54 }
  0xc9   : > { %v458_v57 = vadd.f32 %v457_v51, %v396_v39  ;;  %v491_v59 = vadd.f32 %v490_v52, %v476_v50 }
  0xca   : > { %761 = vst [vmem:[%s926_s9 + $0x28] sm:$0xff] %v745_v55  }
  0xcb   : > { %v459_v61 = vadd.f32 %v458_v57, %v399_v17  ;;  %v492_v62 = vadd.f32 %v491_v59, %v477_v58  ;;  %763 = vst [vmem:[%s926_s9 + $0x38] sm:$0xff] %v755_v56   ;;  %v451_v17 = vld [vmem:[%s916_s29] sm:$0xff] }
  0xcd   : > { %v493_v0 = vadd.f32 %v492_v62, %v478_v60  ;;  %v460_v1 = vadd.f32 %v459_v61, %v401_v23 }
  0xcf   : > { %v461_v2 = vadd.f32 %v460_v1, %v404_v35  ;;  %v494_v4 = vadd.f32 %v493_v0, %v479_v63 }
  0xd1   : > { %v495_v5 = vadd.f32 %v494_v4, %v480_v3  ;;  %v462_v6 = vadd.f32 %v461_v2, %v406_v53 }
  0xd3   : > { %v463_v9 = vadd.f32 %v462_v6, %v961_v18  ;;  %v496_v10 = vadd.f32 %v495_v5, %v481_v7 }
  0xd5   : > { %v497_v12 = vadd.f32 %v496_v10, %v482_v8  ;;  %v464_v13 = vadd.f32 %v463_v9, %v411_v24 }
  0xd7   : > { %v465_v14 = vadd.f32 %v464_v13, %v414_v36  ;;  %v498_v16 = vadd.f32 %v497_v12, %v483_v11 }
  0xd9   : > { %v499_v19 = vadd.f32 %v498_v16, %v484_v15  ;;  %v466_v20 = vadd.f32 %v465_v14, %v416_v54 }
  0xdb   : > { %v467_v23 = vadd.f32 %v466_v20, %v451_v17  ;;  %v500_v25 = vadd.f32 %v499_v19, %v485_v21 }
  0xdd   : > { %468 = vst [vmem:[%s916_s29] sm:$0xff] %v467_v23  ;;  %v501_v26 = vadd.f32 %v500_v25, %v469_v22 }
  0xdf   : > { %502 = vst [vmem:[%s931_s12] sm:$0xff] %v501_v26 }
  0xe0 PF: > { %s15_s19 = sadd.s32 1, %s852_s19   ;;  %s999_s15 = smov %s844_s17 }
  0xe1   : > { %p12_p8 = scmp.ge.s32.totalorder %s15_s19, 6   ;;  %s1000_s16 = smov %s848_s18 }
  0xe2   : > { %s1001_s17 = smov %s1004_s20  ;;  %s1002_s18 = smov %s1008_s21 }
  0xe3   :  { %14 = sbr.rel (!%p12_p8) target bundleno = 3 (0x3), region = 86 }

</bundles_post_ra>
